<compile_context>
chip_gen: v6e
topology: v6e:2x2x1
jax: 0.10.0
libtpu: 0.0.40
codegen_flags: <defaults>
</compile_context>

<pallas_src>
import functools

import jax
import jax.numpy as jnp
from jax.experimental import pallas as pl
from jax.experimental.pallas import tpu as pltpu

C_BACKBONE = 1536   # efficientnet-b3 feature channels
N_FEATS = 80
HIDDEN = 256


# ---------------------------------------------------------------------------
# Tiling helpers
# ---------------------------------------------------------------------------
def _largest_divisor_leq(n, cap):
    cap = max(1, min(cap, n))
    for d in range(cap, 0, -1):
        if n % d == 0:
            return d
    return 1


def _pick_batch_tile(B, hw_packed, K, itemsize, budget_bytes=24 * 1024 * 1024):
    """Largest batch tile whose double-buffered x slab fits a conservative VMEM
    budget (safe for v7x's 64 MiB physical VMEM; v5e/v6e have more headroom)."""
    per_row = 2 * hw_packed * K * itemsize          # double-buffered x bytes / batch row
    if per_row * B <= budget_bytes or B <= 8:
        return B
    bt = int(budget_bytes // per_row)
    bt = max(8, (bt // 8) * 8)                      # keep sublane alignment when tiling
    return min(bt, B)


# ---------------------------------------------------------------------------
# Fused forward kernels (one pallas_call per path).
# TODO(synk): the pretrained EfficientNet-b3 `extract_features` backbone has no
# clean Pallas equivalent here; it is replaced by a deterministic 1x1-conv stub
# (mean-pool over HxW followed by a Cin->1536 projection).
# ---------------------------------------------------------------------------
def _fused_feats_kernel(x_ref, f_ref, wrep_ref, bstub_ref, w1_ref, b1_ref,
                        w2_ref, b2_ref, wxT_ref, wmT_ref, bhf_ref, o_ref,
                        *, inv_hw):
    # Pool: lane-packed sum over spatial, then scale (f32 accumulation even if x is bf16).
    x = x_ref[...].astype(jnp.float32)                          # (Bt, HWp, K)
    pooled = jnp.sum(x, axis=1) * inv_hw                        # (Bt, K) packed channels
    # 1x1-conv stub projection to backbone channels (replicated weight handles packing).
    proj = jnp.dot(pooled, wrep_ref[...],
                   preferred_element_type=jnp.float32) + bstub_ref[...]   # (Bt, 1536)
    # meta: fc1 -> ReLU -> Dropout(id) -> fc2 -> ReLU -> Dropout(id)
    h = jnp.dot(f_ref[...].astype(jnp.float32), w1_ref[...],
                preferred_element_type=jnp.float32) + b1_ref[...]
    h = jnp.maximum(h, 0.0)
    h = jnp.dot(h, w2_ref[...], preferred_element_type=jnp.float32) + b2_ref[...]
    h = jnp.maximum(h, 0.0)                                     # (Bt, 256)
    # classifier_feats on concat([proj, h]) == split-weight VPU mul + row-sum.
    o_ref[...] = (jnp.sum(proj * wxT_ref[...], axis=-1, keepdims=True)
                  + jnp.sum(h * wmT_ref[...], axis=-1, keepdims=True)
                  + bhf_ref[...])


def _fused_nofeat_kernel(x_ref, wrep_ref, bstub_ref, wclsT_ref, bcls_ref, o_ref,
                         *, inv_hw):
    x = x_ref[...].astype(jnp.float32)
    pooled = jnp.sum(x, axis=1) * inv_hw
    proj = jnp.dot(pooled, wrep_ref[...],
                   preferred_element_type=jnp.float32) + bstub_ref[...]
    o_ref[...] = jnp.sum(proj * wclsT_ref[...], axis=-1, keepdims=True) + bcls_ref[...]


# ---------------------------------------------------------------------------
# Model wrapper (mirrors Model.forward)
# ---------------------------------------------------------------------------
def init_params(key, cin):
    ks = jax.random.split(key, 12)
    p = {}
    p["w_stub"] = 0.05 * jax.random.normal(ks[0], (cin, C_BACKBONE), jnp.float32)
    p["b_stub"] = 0.05 * jax.random.normal(ks[1], (1, C_BACKBONE), jnp.float32)
    p["w1"] = 0.05 * jax.random.normal(ks[2], (N_FEATS, HIDDEN), jnp.float32)
    p["b1"] = 0.05 * jax.random.normal(ks[3], (1, HIDDEN), jnp.float32)
    p["w2"] = 0.05 * jax.random.normal(ks[4], (HIDDEN, HIDDEN), jnp.float32)
    p["b2"] = 0.05 * jax.random.normal(ks[5], (1, HIDDEN), jnp.float32)
    # classifier_feats: Linear(1536 + 256 -> 1), weight split into the two concat halves
    p["wx"] = 0.05 * jax.random.normal(ks[6], (C_BACKBONE, 1), jnp.float32)
    p["wm"] = 0.05 * jax.random.normal(ks[7], (HIDDEN, 1), jnp.float32)
    p["b_hf"] = 0.05 * jax.random.normal(ks[8], (1, 1), jnp.float32)
    # classifier: Linear(1536 -> 1)
    p["w_cls"] = 0.05 * jax.random.normal(ks[9], (C_BACKBONE, 1), jnp.float32)
    p["b_cls"] = 0.05 * jax.random.normal(ks[10], (1, 1), jnp.float32)
    return p


def model_forward(params, x_nhwc, features=None):
    B, H, W, Cin = x_nhwc.shape
    HW = H * W
    # Lane-pack small channel counts: last dim k*Cin (<=128) is lane-dense.
    k = _largest_divisor_leq(HW, max(1, 128 // Cin))
    K = k * Cin
    HWp = HW // k
    x_packed = x_nhwc.reshape(B, HWp, K)
    # Replicated stub weight makes sum(packed) @ w_rep == sum(unpacked) @ w_stub exactly.
    w_rep = jnp.tile(params["w_stub"], (k, 1))                  # (K, 1536)

    itemsize = x_packed.dtype.itemsize
    Bt = _pick_batch_tile(B, HWp, K, itemsize)
    Bp = pl.cdiv(B, Bt) * Bt
    if Bp != B:
        x_packed = jnp.pad(x_packed, ((0, Bp - B), (0, 0), (0, 0)))
        if features is not None:
            features = jnp.pad(features, ((0, Bp - B), (0, 0)))
    grid = (Bp // Bt,)

    inv_hw = 1.0 / float(HW)
    common_cp = pltpu.CompilerParams(
        dimension_semantics=("parallel",),              # batch axis shards across TCs
        vmem_limit_bytes=48 * 1024 * 1024,
    )

    flops = 2 * Bp * (HW * Cin + K * C_BACKBONE + C_BACKBONE)
    bytes_acc = (x_packed.size * itemsize + w_rep.size * 4
                 + C_BACKBONE * 4 + Bp * 4)
    if features is not None:
        flops += 2 * Bp * (N_FEATS * HIDDEN + HIDDEN * HIDDEN + HIDDEN)
        bytes_acc += (features.size * features.dtype.itemsize
                      + (N_FEATS * HIDDEN + HIDDEN * HIDDEN + 2 * HIDDEN) * 4)
    ce = pl.CostEstimate(flops=flops, transcendentals=0, bytes_accessed=int(bytes_acc))

    const_map = lambda b: (0, 0)
    if features is not None:
        out = pl.pallas_call(
            functools.partial(_fused_feats_kernel, inv_hw=inv_hw),
            out_shape=jax.ShapeDtypeStruct((Bp, 1), jnp.float32),
            grid=grid,
            in_specs=[
                pl.BlockSpec((Bt, HWp, K), lambda b: (b, 0, 0)),
                pl.BlockSpec((Bt, N_FEATS), lambda b: (b, 0)),
                pl.BlockSpec((K, C_BACKBONE), const_map),
                pl.BlockSpec((1, C_BACKBONE), const_map),
                pl.BlockSpec((N_FEATS, HIDDEN), const_map),
                pl.BlockSpec((1, HIDDEN), const_map),
                pl.BlockSpec((HIDDEN, HIDDEN), const_map),
                pl.BlockSpec((1, HIDDEN), const_map),
                pl.BlockSpec((1, C_BACKBONE), const_map),       # wx^T
                pl.BlockSpec((1, HIDDEN), const_map),           # wm^T
                pl.BlockSpec((1, 1), const_map),
            ],
            out_specs=pl.BlockSpec((Bt, 1), lambda b: (b, 0)),
            compiler_params=common_cp,
            cost_estimate=ce,
        )(x_packed, features, w_rep, params["b_stub"],
          params["w1"], params["b1"], params["w2"], params["b2"],
          params["wx"].T, params["wm"].T, params["b_hf"])
    else:
        out = pl.pallas_call(
            functools.partial(_fused_nofeat_kernel, inv_hw=inv_hw),
            out_shape=jax.ShapeDtypeStruct((Bp, 1), jnp.float32),
            grid=grid,
            in_specs=[
                pl.BlockSpec((Bt, HWp, K), lambda b: (b, 0, 0)),
                pl.BlockSpec((K, C_BACKBONE), const_map),
                pl.BlockSpec((1, C_BACKBONE), const_map),
                pl.BlockSpec((1, C_BACKBONE), const_map),       # w_cls^T
                pl.BlockSpec((1, 1), const_map),
            ],
            out_specs=pl.BlockSpec((Bt, 1), lambda b: (b, 0)),
            compiler_params=common_cp,
            cost_estimate=ce,
        )(x_packed, w_rep, params["b_stub"], params["w_cls"].T, params["b_cls"])

    return out[:B]                                              # (B, 1)


def model_forward_ref(params, x_nhwc, features=None):
    """Pure-JAX reference for correctness checking."""
    B, H, W, Cin = x_nhwc.shape
    pooled = jnp.mean(x_nhwc.reshape(B, H * W, Cin), axis=1) @ params["w_stub"] + params["b_stub"]
    if features is not None:
        h = jnp.maximum(features @ params["w1"] + params["b1"], 0.0)
        h = jnp.maximum(h @ params["w2"] + params["b2"], 0.0)
        return pooled @ params["wx"] + h @ params["wm"] + params["b_hf"]
    return pooled @ params["w_cls"] + params["b_cls"]


if __name__ == "__main__":
    B, H, W, Cin = 2, 16, 16, 4
    key = jax.random.PRNGKey(0)
    k_x, k_f, k_p = jax.random.split(key, 3)
    # NOTE: on v6e/v7x x can be fed as bfloat16 to halve HBM traffic; the kernel
    # casts to f32 and accumulates the pooling / matmuls in f32 either way.
    x = jax.random.normal(k_x, (B, H, W, Cin), jnp.float32)      # layout: NHWC
    feats = jax.random.normal(k_f, (B, N_FEATS), jnp.float32)
    params = init_params(k_p, Cin)

    out_with_feats = jax.block_until_ready(model_forward(params, x, feats))
    out_no_feats = jax.block_until_ready(model_forward(params, x, None))

    ref_with = model_forward_ref(params, x, feats)
    ref_no = model_forward_ref(params, x, None)
    assert out_with_feats.shape == (B, 1) and out_no_feats.shape == (B, 1)
    assert jnp.allclose(out_with_feats, ref_with, atol=1e-4, rtol=1e-4)
    assert jnp.allclose(out_no_feats, ref_no, atol=1e-4, rtol=1e-4)
    print("KERNEL_OK")
</pallas_src>

<mosaic_0001>
module attributes {stable_mosaic.version = 11 : i64} {
  func.func @_fused_feats_kernel(%arg0: i32, %arg1: memref<2x8x128xf32, #tpu.memory_space<vmem>>, %arg2: memref<2x80xf32, #tpu.memory_space<vmem>>, %arg3: memref<128x1536xf32, #tpu.memory_space<vmem>>, %arg4: memref<1x1536xf32, #tpu.memory_space<vmem>>, %arg5: memref<80x256xf32, #tpu.memory_space<vmem>>, %arg6: memref<1x256xf32, #tpu.memory_space<vmem>>, %arg7: memref<256x256xf32, #tpu.memory_space<vmem>>, %arg8: memref<1x256xf32, #tpu.memory_space<vmem>>, %arg9: memref<1x1536xf32, #tpu.memory_space<vmem>>, %arg10: memref<1x256xf32, #tpu.memory_space<vmem>>, %arg11: memref<1x1xf32, #tpu.memory_space<vmem>>, %arg12: memref<2x1xf32, #tpu.memory_space<vmem>>) attributes {dimension_semantics = [#tpu.dimension_semantics<parallel>], iteration_bounds = array<i64: 1>, scalar_prefetch = 0 : i64, scratch_operands = 0 : i64, tpu.core_type = #tpu.core_type<tc>, window_params = [{transform_indices = @transform_0, window_bounds = array<i64: 2, 8, 128>}, {transform_indices = @transform_1, window_bounds = array<i64: 2, 80>}, {pipeline_mode = #tpu.pipeline_mode<synchronous>, transform_indices = @transform_2, window_bounds = array<i64: 128, 1536>}, {pipeline_mode = #tpu.pipeline_mode<synchronous>, transform_indices = @transform_3, window_bounds = array<i64: 1, 1536>}, {pipeline_mode = #tpu.pipeline_mode<synchronous>, transform_indices = @transform_4, window_bounds = array<i64: 80, 256>}, {pipeline_mode = #tpu.pipeline_mode<synchronous>, transform_indices = @transform_5, window_bounds = array<i64: 1, 256>}, {pipeline_mode = #tpu.pipeline_mode<synchronous>, transform_indices = @transform_6, window_bounds = array<i64: 256, 256>}, {pipeline_mode = #tpu.pipeline_mode<synchronous>, transform_indices = @transform_7, window_bounds = array<i64: 1, 256>}, {pipeline_mode = #tpu.pipeline_mode<synchronous>, transform_indices = @transform_8, window_bounds = array<i64: 1, 1536>}, {pipeline_mode = #tpu.pipeline_mode<synchronous>, transform_indices = @transform_9, window_bounds = array<i64: 1, 256>}, {pipeline_mode = #tpu.pipeline_mode<synchronous>, transform_indices = @transform_10, window_bounds = array<i64: 1, 1>}, {transform_indices = @transform_11, window_bounds = array<i64: 2, 1>}]} {
    %c0 = arith.constant 0 : index
    %c0_0 = arith.constant 0 : index
    %c0_1 = arith.constant 0 : index
    %0 = vector.load %arg1[%c0, %c0_0, %c0_1] : memref<2x8x128xf32, #tpu.memory_space<vmem>>, vector<2x8x128xf32>
    %cst = arith.constant dense<0.000000e+00> : vector<2x128xf32>
    %1 = vector.multi_reduction <add>, %0, %cst [1] : vector<2x8x128xf32> to vector<2x128xf32>
    %cst_2 = arith.constant 3.906250e-03 : f32
    %2 = vector.broadcast %cst_2 : f32 to vector<2x128xf32>
    %3 = arith.mulf %1, %2 : vector<2x128xf32>
    %c0_3 = arith.constant 0 : index
    %c0_4 = arith.constant 0 : index
    %4 = vector.load %arg3[%c0_3, %c0_4] : memref<128x1536xf32, #tpu.memory_space<vmem>>, vector<128x1536xf32>
    %cst_5 = arith.constant dense<0.000000e+00> : vector<2x1536xf32>
    %5 = tpu.matmul %3, %4, %cst_5 {dimension_numbers = #tpu.dot_dimension_numbers<[1], [0], [0], [1], [0, 0, 1, 1], [], []>} : vector<2x128xf32>, vector<128x1536xf32>, vector<2x1536xf32> -> vector<2x1536xf32>
    %c0_6 = arith.constant 0 : index
    %c0_7 = arith.constant 0 : index
    %6 = vector.load %arg4[%c0_6, %c0_7] : memref<1x1536xf32, #tpu.memory_space<vmem>>, vector<1x1536xf32>
    %7 = vector.broadcast %6 : vector<1x1536xf32> to vector<2x1536xf32>
    %8 = arith.addf %5, %7 : vector<2x1536xf32>
    %c0_8 = arith.constant 0 : index
    %c0_9 = arith.constant 0 : index
    %9 = vector.load %arg2[%c0_8, %c0_9] : memref<2x80xf32, #tpu.memory_space<vmem>>, vector<2x80xf32>
    %c0_10 = arith.constant 0 : index
    %c0_11 = arith.constant 0 : index
    %10 = vector.load %arg5[%c0_10, %c0_11] : memref<80x256xf32, #tpu.memory_space<vmem>>, vector<80x256xf32>
    %cst_12 = arith.constant dense<0.000000e+00> : vector<2x256xf32>
    %11 = tpu.matmul %9, %10, %cst_12 {dimension_numbers = #tpu.dot_dimension_numbers<[1], [0], [0], [1], [0, 0, 1, 1], [], []>} : vector<2x80xf32>, vector<80x256xf32>, vector<2x256xf32> -> vector<2x256xf32>
    %c0_13 = arith.constant 0 : index
    %c0_14 = arith.constant 0 : index
    %12 = vector.load %arg6[%c0_13, %c0_14] : memref<1x256xf32, #tpu.memory_space<vmem>>, vector<1x256xf32>
    %13 = vector.broadcast %12 : vector<1x256xf32> to vector<2x256xf32>
    %14 = arith.addf %11, %13 : vector<2x256xf32>
    %cst_15 = arith.constant 0.000000e+00 : f32
    %15 = vector.broadcast %cst_15 : f32 to vector<2x256xf32>
    %16 = arith.maximumf %14, %15 : vector<2x256xf32>
    %c0_16 = arith.constant 0 : index
    %c0_17 = arith.constant 0 : index
    %17 = vector.load %arg7[%c0_16, %c0_17] : memref<256x256xf32, #tpu.memory_space<vmem>>, vector<256x256xf32>
    %cst_18 = arith.constant dense<0.000000e+00> : vector<2x256xf32>
    %18 = tpu.matmul %16, %17, %cst_18 {dimension_numbers = #tpu.dot_dimension_numbers<[1], [0], [0], [1], [0, 0, 1, 1], [], []>} : vector<2x256xf32>, vector<256x256xf32>, vector<2x256xf32> -> vector<2x256xf32>
    %c0_19 = arith.constant 0 : index
    %c0_20 = arith.constant 0 : index
    %19 = vector.load %arg8[%c0_19, %c0_20] : memref<1x256xf32, #tpu.memory_space<vmem>>, vector<1x256xf32>
    %20 = vector.broadcast %19 : vector<1x256xf32> to vector<2x256xf32>
    %21 = arith.addf %18, %20 : vector<2x256xf32>
    %cst_21 = arith.constant 0.000000e+00 : f32
    %22 = vector.broadcast %cst_21 : f32 to vector<2x256xf32>
    %23 = arith.maximumf %21, %22 : vector<2x256xf32>
    %c0_22 = arith.constant 0 : index
    %c0_23 = arith.constant 0 : index
    %24 = vector.load %arg9[%c0_22, %c0_23] : memref<1x1536xf32, #tpu.memory_space<vmem>>, vector<1x1536xf32>
    %25 = vector.broadcast %24 : vector<1x1536xf32> to vector<2x1536xf32>
    %26 = arith.mulf %8, %25 : vector<2x1536xf32>
    %cst_24 = arith.constant dense<0.000000e+00> : vector<2xf32>
    %27 = vector.multi_reduction <add>, %26, %cst_24 [1] : vector<2x1536xf32> to vector<2xf32>
    %28 = vector.shape_cast %27 : vector<2xf32> to vector<2x1xf32>
    %c0_25 = arith.constant 0 : index
    %c0_26 = arith.constant 0 : index
    %29 = vector.load %arg10[%c0_25, %c0_26] : memref<1x256xf32, #tpu.memory_space<vmem>>, vector<1x256xf32>
    %30 = vector.broadcast %29 : vector<1x256xf32> to vector<2x256xf32>
    %31 = arith.mulf %23, %30 : vector<2x256xf32>
    %cst_27 = arith.constant dense<0.000000e+00> : vector<2xf32>
    %32 = vector.multi_reduction <add>, %31, %cst_27 [1] : vector<2x256xf32> to vector<2xf32>
    %33 = vector.shape_cast %32 : vector<2xf32> to vector<2x1xf32>
    %34 = arith.addf %28, %33 : vector<2x1xf32>
    %c0_28 = arith.constant 0 : index
    %c0_29 = arith.constant 0 : index
    %35 = vector.load %arg11[%c0_28, %c0_29] : memref<1x1xf32, #tpu.memory_space<vmem>>, vector<1x1xf32>
    %36 = vector.broadcast %35 : vector<1x1xf32> to vector<2x1xf32>
    %37 = arith.addf %34, %36 : vector<2x1xf32>
    %c0_30 = arith.constant 0 : index
    %c0_31 = arith.constant 0 : index
    %38 = vector.load %arg12[%c0_30, %c0_31] : memref<2x1xf32, #tpu.memory_space<vmem>>, vector<2x1xf32>
    tpu.vector_store %arg12[%c0_30, %c0_31], %37 {strides = array<i32>} : memref<2x1xf32, #tpu.memory_space<vmem>>, vector<2x1xf32>,
    return
  }
  func.func @transform_0(%arg0: i32) -> (i32, i32, i32) {
    %c0_i32 = arith.constant 0 : i32
    %c0_i32_0 = arith.constant 0 : i32
    %c0_i32_1 = arith.constant 0 : i32
    return %arg0, %c0_i32, %c0_i32_0 : i32, i32, i32
  }
  func.func @transform_1(%arg0: i32) -> (i32, i32) {
    %c0_i32 = arith.constant 0 : i32
    %c0_i32_0 = arith.constant 0 : i32
    return %arg0, %c0_i32 : i32, i32
  }
  func.func @transform_2(%arg0: i32) -> (i32, i32) {
    %c0_i32 = arith.constant 0 : i32
    %c0_i32_0 = arith.constant 0 : i32
    %c0_i32_1 = arith.constant 0 : i32
    return %c0_i32, %c0_i32_0 : i32, i32
  }
  func.func @transform_3(%arg0: i32) -> (i32, i32) {
    %c0_i32 = arith.constant 0 : i32
    %c0_i32_0 = arith.constant 0 : i32
    %c0_i32_1 = arith.constant 0 : i32
    return %c0_i32, %c0_i32_0 : i32, i32
  }
  func.func @transform_4(%arg0: i32) -> (i32, i32) {
    %c0_i32 = arith.constant 0 : i32
    %c0_i32_0 = arith.constant 0 : i32
    %c0_i32_1 = arith.constant 0 : i32
    return %c0_i32, %c0_i32_0 : i32, i32
  }
  func.func @transform_5(%arg0: i32) -> (i32, i32) {
    %c0_i32 = arith.constant 0 : i32
    %c0_i32_0 = arith.constant 0 : i32
    %c0_i32_1 = arith.constant 0 : i32
    return %c0_i32, %c0_i32_0 : i32, i32
  }
  func.func @transform_6(%arg0: i32) -> (i32, i32) {
    %c0_i32 = arith.constant 0 : i32
    %c0_i32_0 = arith.constant 0 : i32
    %c0_i32_1 = arith.constant 0 : i32
    return %c0_i32, %c0_i32_0 : i32, i32
  }
  func.func @transform_7(%arg0: i32) -> (i32, i32) {
    %c0_i32 = arith.constant 0 : i32
    %c0_i32_0 = arith.constant 0 : i32
    %c0_i32_1 = arith.constant 0 : i32
    return %c0_i32, %c0_i32_0 : i32, i32
  }
  func.func @transform_8(%arg0: i32) -> (i32, i32) {
    %c0_i32 = arith.constant 0 : i32
    %c0_i32_0 = arith.constant 0 : i32
    %c0_i32_1 = arith.constant 0 : i32
    return %c0_i32, %c0_i32_0 : i32, i32
  }
  func.func @transform_9(%arg0: i32) -> (i32, i32) {
    %c0_i32 = arith.constant 0 : i32
    %c0_i32_0 = arith.constant 0 : i32
    %c0_i32_1 = arith.constant 0 : i32
    return %c0_i32, %c0_i32_0 : i32, i32
  }
  func.func @transform_10(%arg0: i32) -> (i32, i32) {
    %c0_i32 = arith.constant 0 : i32
    %c0_i32_0 = arith.constant 0 : i32
    %c0_i32_1 = arith.constant 0 : i32
    return %c0_i32, %c0_i32_0 : i32, i32
  }
  func.func @transform_11(%arg0: i32) -> (i32, i32) {
    %c0_i32 = arith.constant 0 : i32
    %c0_i32_0 = arith.constant 0 : i32
    return %arg0, %c0_i32 : i32, i32
  }
}

</mosaic_0001>

<bundles_post_ra>
// kernel: tpu_custom_call.1
= control target key start
LH: loop header
LB: loop body
LE: loop exit
PB: predicated region body
PF: predicated region fallthrough
CT: control target
= control target key end

     0   :  { %s1540_s0 = inlined_call_operand.hbm [shape: f32[2,8,128], index: 0, kind: input, shape index: {}]   ;;  %s1541_s1 = inlined_call_operand.vmem [shape: f32[2,80], index: 1, kind: input, shape index: {}]   ;;  %s1542_s2 = inlined_call_operand.hbm [shape: f32[128,1536], index: 2, kind: input, shape index: {}]   ;;  %s1543_s3 = inlined_call_operand.hbm [shape: f32[1,1536], index: 3, kind: input, shape index: {}]   ;;  %s1544_s4 = inlined_call_operand.hbm [shape: f32[80,256], index: 4, kind: input, shape index: {}]   ;;  %s1545_s5 = inlined_call_operand.vmem [shape: f32[1,256], index: 5, kind: input, shape index: {}]   ;;  %s1546_s6 = inlined_call_operand.hbm [shape: f32[256,256], index: 6, kind: input, shape index: {}]   ;;  %s1547_s7 = inlined_call_operand.hbm [shape: f32[1,256], index: 7, kind: input, shape index: {}]   ;;  %s1548_s8 = inlined_call_operand.vmem [shape: f32[1,1536], index: 8, kind: input, shape index: {}]   ;;  %s1549_s9 = inlined_call_operand.vmem [shape: f32[1,256], index: 9, kind: input, shape index: {}]   ;;  %s1550_s10 = inlined_call_operand.<no memory space> [shape: f32[1,1], index: 10, kind: input, shape index: {}]   ;;  %s1551_s11 = inlined_call_operand.vmem [shape: f32[2,1], index: 11, kind: output, shape index: {}]  }
   0x1   :  { %v16_v0 = vstv %s1550_s10 }
   0x2   :  { %17 = vst [vmem:[#allocation2] sm:$0x1] %v16_v0 }
   0x3   :  { %18 = vsyncpa [#allocation4], 0 }
   0x4   :  { %19 = vsyncpa [#allocation6], 0 }
   0x5   :  { %20 = vsyncpa [#allocation9], 0 }
   0x6   :  { %21 = vsyncpa [#allocation12], 0  ;;  %s1363_s19 = smov [#allocation5]  }
   0x7   :  { %s41_s20 = sshll.u32 %s1363_s19, 4  ;;  %s42_s20 = int_to_ptr.vmem [resolvable:$true] %s41_s20 }
   0x8   :  { %s1243_s21 = scalar_lea.vmem %s42_s20, 24576  ;;  %p1248_p1 = scmp.lt.s32.totalorder %s42_s20, %s42_s20 }
   0x9   :  { %p1244_p0 = scmp.ne.s32.totalorder %s42_s20, %s1243_s21  ;;  %p1249_p2 = scmp.lt.s32.totalorder %s1243_s21, %s1243_s21 }
   0xb   :  { %p1250_p3 = por %p1249_p2, %p1248_p1 }
   0xd   :  { %p1251_p4 = pnand %p1250_p3, %p1244_p0 }
   0xf   :  { %1254 = shalt.err (!%p1251_p4)
}
  0x10   :  { %s1364_s22 = smov 1536   ;;  %s1365_s23 = smov 96  }
  0x11   :  { %47 = dma.hbm_to_vmem [thread:$0]  %s1542_s2, 24576, %s42_s20, [#allocation6], %s1364_s22, %s1364_s22, %s1365_s23  }
  0x12   :  { %s1366_s10 = smov [#allocation8]  }
  0x13   :  { %s63_s26 = sshll.u32 %s1366_s10, 4  ;;  %s64_s26 = int_to_ptr.vmem [resolvable:$true] %s63_s26 }
  0x14   :  { %s1263_s27 = scalar_lea.vmem %s64_s26, 2560  ;;  %p1268_p6 = scmp.lt.s32.totalorder %s64_s26, %s64_s26 }
  0x15   :  { %p1264_p5 = scmp.ne.s32.totalorder %s64_s26, %s1263_s27  ;;  %p1269_p7 = scmp.lt.s32.totalorder %s1263_s27, %s1263_s27 }
  0x17   :  { %p1270_p8 = por %p1269_p7, %p1268_p6 }
  0x19   :  { %p1271_p9 = pnand %p1270_p8, %p1264_p5 }
  0x1b   :  { %1274 = shalt.err (!%p1271_p9)
}
  0x1c   :  { %s1367_s28 = smov 256   ;;  %s1368_s29 = smov 16  }
  0x1d   :  { %69 = dma.hbm_to_vmem [thread:$0]  %s1544_s4, 2560, %s64_s26, [#allocation9], %s1367_s28, %s1367_s28, %s1368_s29  }
  0x1e   :  { %s1369_s2 = smov [#allocation3]  }
  0x1f   :  { %s27_s13 = sshll.u32 %s1369_s2, 4  ;;  %s28_s13 = int_to_ptr.vmem [resolvable:$true] %s27_s13 }
  0x20   :  { %s1283_s14 = scalar_lea.vmem %s28_s13, 256  ;;  %p1288_p11 = scmp.lt.s32.totalorder %s28_s13, %s28_s13 }
  0x21   :  { %p1284_p10 = scmp.ne.s32.totalorder %s28_s13, %s1283_s14  ;;  %p1289_p12 = scmp.lt.s32.totalorder %s1283_s14, %s1283_s14 }
  0x23   :  { %p1290_p13 = por %p1289_p12, %p1288_p11 }
  0x25   :  { %p1291_p0 = pnand %p1290_p13, %p1284_p10 }
  0x27   :  { %1294 = shalt.err (!%p1291_p0)
}
  0x28   :  { %s1370_s15 = smov 128   ;;  %s1371_s16 = smov 8  }
  0x29   :  { %33 = dma.hbm_to_vmem [thread:$0]  %s1540_s0, 256, %s28_s13, [#allocation4], %s1370_s15, %s1370_s15, %s1371_s16  }
  0x2a   :  { %s1372_s19 = smov [#allocation7]   ;;  %s1373_s4 = smov [#allocation10]  }
  0x2b   :  { %s54_s20 = sshll.u32 %s1372_s19, 4  ;;  %s77_s21 = sshll.u32 %s1373_s4, 4  ;;  %s55_s20 = int_to_ptr.vmem [resolvable:$true] %s54_s20  ;;  %s78_s21 = int_to_ptr.vmem [resolvable:$true] %s77_s21 }
  0x2c   :  { %s1303_s22 = scalar_lea.vmem %s55_s20, 192  ;;  %p1308_p2 = scmp.lt.s32.totalorder %s55_s20, %s55_s20 }
  0x2d   :  { %p1304_p1 = scmp.ne.s32.totalorder %s55_s20, %s1303_s22  ;;  %p1309_p3 = scmp.lt.s32.totalorder %s1303_s22, %s1303_s22 }
  0x2f   :  { %p1310_p4 = por %p1309_p3, %p1308_p2 }
  0x31   :  { %p1311_p5 = pnand %p1310_p4, %p1304_p1 }
  0x33   :  { %1314 = shalt.err (!%p1311_p5)
}
  0x34   :  { %57 = dma.hbm_to_vmem [thread:$0]  %s1543_s3, 192, %s55_s20, [#allocation6]  }
  0x35   :  { %s1323_s25 = scalar_lea.vmem %s78_s21, 8192  ;;  %p1328_p7 = scmp.lt.s32.totalorder %s78_s21, %s78_s21 }
  0x36   :  { %p1324_p6 = scmp.ne.s32.totalorder %s78_s21, %s1323_s25  ;;  %p1329_p8 = scmp.lt.s32.totalorder %s1323_s25, %s1323_s25 }
  0x38   :  { %p1330_p9 = por %p1329_p8, %p1328_p7 }
  0x3a   :  { %p1331_p10 = pnand %p1330_p9, %p1324_p6 }
  0x3c   :  { %1334 = shalt.err (!%p1331_p10)
}
  0x3d   :  { %83 = dma.hbm_to_vmem [thread:$0]  %s1546_s6, 8192, %s78_s21, [#allocation9], %s1367_s28, %s1367_s28, %s1368_s29  }
  0x3e   :  { %s1374_s26 = smov [#allocation11]  }
  0x3f   :  { %s90_s27 = sshll.u32 %s1374_s26, 4  ;;  %s91_s27 = int_to_ptr.vmem [resolvable:$true] %s90_s27 }
  0x40   :  { %s1343_s30 = scalar_lea.vmem %s91_s27, 32  ;;  %p1348_p12 = scmp.lt.s32.totalorder %s91_s27, %s91_s27 }
  0x41   :  { %p1344_p11 = scmp.ne.s32.totalorder %s91_s27, %s1343_s30  ;;  %p1349_p13 = scmp.lt.s32.totalorder %s1343_s30, %s1343_s30 }
  0x43   :  { %p1350_p0 = por %p1349_p13, %p1348_p12 }
  0x45   :  { %p1351_p1 = pnand %p1350_p0, %p1344_p11 }
  0x47   :  { %1354 = shalt.err (!%p1351_p1)
}
  0x48   :  { %93 = dma.hbm_to_vmem [thread:$0]  %s1547_s7, 32, %s91_s27, [#allocation12]  }
  0x49   :  { %1355 = dma.done.wait [#allocation4], 256  }
  0x4a   :  { %1356 = vsyncadd [#allocation4], 4294967040 }
  0x4b   :  { %1357 = dma.done.wait [#allocation6], 24768  }
  0x4c   :  { %1358 = vsyncadd [#allocation6], 4294942528 }
  0x4d   :  { %1359 = dma.done.wait [#allocation9], 10752  }
  0x4e   :  { %1360 = vsyncadd [#allocation9], 4294956544 }
  0x4f   :  { %1361 = dma.done.wait [#allocation12], 32  }
  0x50   :  { %1362 = vsyncadd [#allocation12], 4294967264  ;;  %v1375_v1 = vmov 0.0   ;;  %v315_v2 = vld [vmem:[#allocation5 + $0x5a8] sm:$0xff]  ;;  %v314_v3 = vld [vmem:[#allocation5 + $0x5a0] sm:$0xff]  ;;  %vm392_vm0 = vcmask 1041409  }
  0x51   :  { %459 = vmatprep.mubr.f32.mxu0 %v1375_v1  ;;  %672 = vmatprep.mubr.f32.mxu1 %v1375_v1  ;;  %v303_v4 = vld [vmem:[#allocation5 + $0x548] sm:$0xff]  ;;  %v302_v5 = vld [vmem:[#allocation5 + $0x540] sm:$0xff]  ;;  %v118_v15 = vld [vmem:[#allocation3] sm:$0xff]  ;;  %vm854_vm1 = vcmask 654336   ;;  %vm1156_vm2 = vcmask 1041408   ;;  %vm1210_vm3 = vcmask 1024  }
  0x52   :  { %395 = vmatprep.subr.mxu0 %v315_v2  ;;  %v291_v6 = vld [vmem:[#allocation5 + $0x4e8] sm:$0xff]  ;;  %v290_v7 = vld [vmem:[#allocation5 + $0x4e0] sm:$0xff]  ;;  %v119_v17 = vld [vmem:[#allocation3 + $0x8] sm:$0xff]  ;;  %v120_v18 = vrot.slane %v118_v15, 4 }
  0x53   :  { %396 = vmatpush1.msra.mxu0 %v314_v3  ;;  %v279_v8 = vld [vmem:[#allocation5 + $0x488] sm:$0xff]  ;;  %v278_v9 = vld [vmem:[#allocation5 + $0x480] sm:$0xff]  ;;  %v126_v20 = vrot.slane %v119_v17, 4  ;;  %v321_v42 = vld [vmem:[#allocation5 + $0x5d8] sm:$0xff] }
  0x54   :  { %397 = vmatprep.subr.mxu0 %v303_v4  ;;  %v267_v10 = vld [vmem:[#allocation5 + $0x428] sm:$0xff]  ;;  %v266_v11 = vld [vmem:[#allocation5 + $0x420] sm:$0xff]  ;;  %v121_v22 = vadd.f32 %v120_v18, %v118_v15  ;;  %608 = vmatprep.subr.mxu1 %v321_v42  ;;  %v320_v44 = vld [vmem:[#allocation5 + $0x5d0] sm:$0xff] }
  0x55   :  { %398 = vmatpush1.msra.mxu0 %v302_v5  ;;  %v255_v12 = vld [vmem:[#allocation5 + $0x3c8] sm:$0xff]  ;;  %v254_v13 = vld [vmem:[#allocation5 + $0x3c0] sm:$0xff]  ;;  %v127_v24 = vadd.f32 %v126_v20, %v119_v17  ;;  %609 = vmatpush1.msra.mxu1 %v320_v44  ;;  %v309_v46 = vld [vmem:[#allocation5 + $0x578] sm:$0xff] }
  0x56   :  { %399 = vmatprep.subr.mxu0 %v291_v6  ;;  %v243_v14 = vld [vmem:[#allocation5 + $0x368] sm:$0xff]  ;;  %v242_v16 = vld [vmem:[#allocation5 + $0x360] sm:$0xff]  ;;  %v122_v26 = vrot.slane %v121_v22, 2  ;;  %v308_v47 = vld [vmem:[#allocation5 + $0x570] sm:$0xff]  ;;  %610 = vmatprep.subr.mxu1 %v309_v46 }
  0x57   :  { %400 = vmatpush1.msra.mxu0 %v290_v7  ;;  %v231_v19 = vld [vmem:[#allocation5 + $0x308] sm:$0xff]  ;;  %v230_v21 = vld [vmem:[#allocation5 + $0x300] sm:$0xff]  ;;  %v128_v28 = vrot.slane %v127_v24, 2  ;;  %v297_v51 = vld [vmem:[#allocation5 + $0x518] sm:$0xff]  ;;  %611 = vmatpush1.msra.mxu1 %v308_v47 }
  0x58   :  { %401 = vmatprep.subr.mxu0 %v279_v8  ;;  %v219_v23 = vld [vmem:[#allocation5 + $0x2a8] sm:$0xff]  ;;  %v218_v25 = vld [vmem:[#allocation5 + $0x2a0] sm:$0xff]  ;;  %v123_v30 = vadd.f32 %v122_v26, %v121_v22  ;;  %v296_v53 = vld [vmem:[#allocation5 + $0x510] sm:$0xff]  ;;  %612 = vmatprep.subr.mxu1 %v297_v51 }
  0x59   :  { %402 = vmatpush1.msra.mxu0 %v278_v9  ;;  %v207_v27 = vld [vmem:[#allocation5 + $0x248] sm:$0xff]  ;;  %v206_v29 = vld [vmem:[#allocation5 + $0x240] sm:$0xff]  ;;  %v129_v32 = vadd.f32 %v128_v28, %v127_v24  ;;  %v285_v54 = vld [vmem:[#allocation5 + $0x4b8] sm:$0xff]  ;;  %613 = vmatpush1.msra.mxu1 %v296_v53 }
  0x5a   :  { %403 = vmatprep.subr.mxu0 %v267_v10  ;;  %v195_v31 = vld [vmem:[#allocation5 + $0x1e8] sm:$0xff]  ;;  %v194_v33 = vld [vmem:[#allocation5 + $0x1e0] sm:$0xff]  ;;  %v124_v34 = vrot.slane %v123_v30, 1  ;;  %v284_v56 = vld [vmem:[#allocation5 + $0x4b0] sm:$0xff]  ;;  %614 = vmatprep.subr.mxu1 %v285_v54 }
  0x5b   :  { %404 = vmatpush1.msra.mxu0 %v266_v11  ;;  %v183_v35 = vld [vmem:[#allocation5 + $0x188] sm:$0xff]  ;;  %v130_v36 = vrot.slane %v129_v32, 1  ;;  %v182_v37 = vld [vmem:[#allocation5 + $0x180] sm:$0xff]  ;;  %v273_v58 = vld [vmem:[#allocation5 + $0x458] sm:$0xff]  ;;  %615 = vmatpush1.msra.mxu1 %v284_v56 }
  0x5c   :  { %405 = vmatprep.subr.mxu0 %v255_v12  ;;  %v171_v38 = vld [vmem:[#allocation5 + $0x128] sm:$0xff]  ;;  %v125_v39 = vadd.f32 %v124_v34, %v123_v30  ;;  %v170_v41 = vld [vmem:[#allocation5 + $0x120] sm:$0xff]  ;;  %v317_v60 = vld [vmem:[#allocation5 + $0x5b8] sm:$0xff]  ;;  %616 = vmatprep.subr.mxu1 %v273_v58 }
  0x5d   :  { %406 = vmatpush1.msra.mxu0 %v254_v13  ;;  %v131_v40 = vadd.f32 %v130_v36, %v129_v32  ;;  %v159_v43 = vld [vmem:[#allocation5 + $0xc8] sm:$0xff]  ;;  %v158_v45 = vld [vmem:[#allocation5 + $0xc0] sm:$0xff]  ;;  %v316_v61 = vld [vmem:[#allocation5 + $0x5b0] sm:$0xff] }
  0x5e   :  { %407 = vmatprep.subr.mxu0 %v243_v14  ;;  %v147_v48 = vld [vmem:[#allocation5 + $0x68] sm:$0xff]  ;;  %v132_v49 = vmul.f32 0.00390625, %v125_v39  ;;  %v146_v52 = vld [vmem:[#allocation5 + $0x60] sm:$0xff]  ;;  %v305_v62 = vld [vmem:[#allocation5 + $0x558] sm:$0xff] }
  0x5f   :  { %408 = vmatpush1.msra.mxu0 %v242_v16  ;;  %v133_v50 = vmul.f32 0.00390625, %v131_v40  ;;  %v135_v55 = vld [vmem:[#allocation5 + $0x8] sm:$0xff]  ;;  %v134_v57 = vld [vmem:[#allocation5] sm:$0xff]  ;;  %v272_v63 = vld [vmem:[#allocation5 + $0x450] sm:$0xff] }
  0x60   :  { %409 = vmatprep.subr.mxu0 %v231_v19  ;;  %v304_v0 = vld [vmem:[#allocation5 + $0x550] sm:$0xff]  ;;  %v261_v2 = vld [vmem:[#allocation5 + $0x3f8] sm:$0xff]  ;;  %617 = vmatpush1.msra.mxu1 %v272_v63  ;;  %v319_v58 = vld [vmem:[#allocation5 + $0x5c8] sm:$0xff] }
  0x61   :  { %410 = vmatpush1.msra.mxu0 %v230_v21  ;;  %v1465_v59 = vsel %vm392_vm0, %v133_v50, %v132_v49  ;;  %v293_v3 = vld [vmem:[#allocation5 + $0x4f8] sm:$0xff]  ;;  %v260_v4 = vld [vmem:[#allocation5 + $0x3f0] sm:$0xff]  ;;  %618 = vmatprep.subr.mxu1 %v261_v2  ;;  %v306_v63 = vld [vmem:[#allocation5 + $0x560] sm:$0xff] }
  0x62   :  { %411 = vmatprep.subr.mxu0 %v219_v23  ;;  %v292_v5 = vld [vmem:[#allocation5 + $0x4f0] sm:$0xff]  ;;  %v249_v6 = vld [vmem:[#allocation5 + $0x398] sm:$0xff]  ;;  %619 = vmatpush1.msra.mxu1 %v260_v4  ;;  %v295_v2 = vld [vmem:[#allocation5 + $0x508] sm:$0xff] }
  0x63   :  { %412 = vmatpush1.msra.mxu0 %v218_v25  ;;  %v281_v7 = vld [vmem:[#allocation5 + $0x498] sm:$0xff]  ;;  %v248_v8 = vld [vmem:[#allocation5 + $0x390] sm:$0xff]  ;;  %620 = vmatprep.subr.mxu1 %v249_v6  ;;  %v294_v4 = vld [vmem:[#allocation5 + $0x500] sm:$0xff] }
  0x64   :  { %413 = vmatprep.subr.mxu0 %v207_v27  ;;  %v280_v9 = vld [vmem:[#allocation5 + $0x490] sm:$0xff]  ;;  %v237_v10 = vld [vmem:[#allocation5 + $0x338] sm:$0xff]  ;;  %621 = vmatpush1.msra.mxu1 %v248_v8  ;;  %v283_v6 = vld [vmem:[#allocation5 + $0x4a8] sm:$0xff] }
  0x65   :  { %414 = vmatpush1.msra.mxu0 %v206_v29  ;;  %v269_v11 = vld [vmem:[#allocation5 + $0x438] sm:$0xff]  ;;  %v236_v12 = vld [vmem:[#allocation5 + $0x330] sm:$0xff]  ;;  %622 = vmatprep.subr.mxu1 %v237_v10  ;;  %v282_v8 = vld [vmem:[#allocation5 + $0x4a0] sm:$0xff] }
  0x66   :  { %415 = vmatprep.subr.mxu0 %v195_v31  ;;  %v268_v13 = vld [vmem:[#allocation5 + $0x430] sm:$0xff]  ;;  %v225_v14 = vld [vmem:[#allocation5 + $0x2d8] sm:$0xff]  ;;  %623 = vmatpush1.msra.mxu1 %v236_v12  ;;  %v271_v10 = vld [vmem:[#allocation5 + $0x448] sm:$0xff] }
  0x67   :  { %416 = vmatpush1.msra.mxu0 %v194_v33  ;;  %v257_v15 = vld [vmem:[#allocation5 + $0x3d8] sm:$0xff]  ;;  %v224_v16 = vld [vmem:[#allocation5 + $0x2d0] sm:$0xff]  ;;  %624 = vmatprep.subr.mxu1 %v225_v14  ;;  %v270_v12 = vld [vmem:[#allocation5 + $0x440] sm:$0xff] }
  0x68   :  { %417 = vmatprep.subr.mxu0 %v183_v35  ;;  %v256_v17 = vld [vmem:[#allocation5 + $0x3d0] sm:$0xff]  ;;  %v213_v18 = vld [vmem:[#allocation5 + $0x278] sm:$0xff]  ;;  %625 = vmatpush1.msra.mxu1 %v224_v16  ;;  %v259_v14 = vld [vmem:[#allocation5 + $0x3e8] sm:$0xff] }
  0x69   :  { %418 = vmatpush1.msra.mxu0 %v182_v37  ;;  %v245_v19 = vld [vmem:[#allocation5 + $0x378] sm:$0xff]  ;;  %v212_v20 = vld [vmem:[#allocation5 + $0x270] sm:$0xff]  ;;  %626 = vmatprep.subr.mxu1 %v213_v18  ;;  %v258_v16 = vld [vmem:[#allocation5 + $0x3e0] sm:$0xff] }
  0x6a   :  { %419 = vmatprep.subr.mxu0 %v171_v38  ;;  %v244_v21 = vld [vmem:[#allocation5 + $0x370] sm:$0xff]  ;;  %v201_v22 = vld [vmem:[#allocation5 + $0x218] sm:$0xff]  ;;  %627 = vmatpush1.msra.mxu1 %v212_v20  ;;  %v247_v18 = vld [vmem:[#allocation5 + $0x388] sm:$0xff] }
  0x6b   :  { %420 = vmatpush1.msra.mxu0 %v170_v41  ;;  %v233_v23 = vld [vmem:[#allocation5 + $0x318] sm:$0xff]  ;;  %v200_v24 = vld [vmem:[#allocation5 + $0x210] sm:$0xff]  ;;  %628 = vmatprep.subr.mxu1 %v201_v22  ;;  %v246_v20 = vld [vmem:[#allocation5 + $0x380] sm:$0xff] }
  0x6c   :  { %421 = vmatprep.subr.mxu0 %v159_v43  ;;  %v232_v25 = vld [vmem:[#allocation5 + $0x310] sm:$0xff]  ;;  %v189_v26 = vld [vmem:[#allocation5 + $0x1b8] sm:$0xff]  ;;  %629 = vmatpush1.msra.mxu1 %v200_v24  ;;  %v235_v22 = vld [vmem:[#allocation5 + $0x328] sm:$0xff] }
  0x6d   :  { %422 = vmatpush1.msra.mxu0 %v158_v45  ;;  %v221_v27 = vld [vmem:[#allocation5 + $0x2b8] sm:$0xff]  ;;  %v188_v28 = vld [vmem:[#allocation5 + $0x1b0] sm:$0xff]  ;;  %630 = vmatprep.subr.mxu1 %v189_v26  ;;  %v234_v24 = vld [vmem:[#allocation5 + $0x320] sm:$0xff] }
  0x6e   :  { %423 = vmatprep.subr.mxu0 %v147_v48  ;;  %v220_v29 = vld [vmem:[#allocation5 + $0x2b0] sm:$0xff]  ;;  %v177_v30 = vld [vmem:[#allocation5 + $0x158] sm:$0xff]  ;;  %631 = vmatpush1.msra.mxu1 %v188_v28  ;;  %v223_v26 = vld [vmem:[#allocation5 + $0x2c8] sm:$0xff] }
  0x6f   :  { %424 = vmatpush1.msra.mxu0 %v146_v52  ;;  %v209_v31 = vld [vmem:[#allocation5 + $0x258] sm:$0xff]  ;;  %v176_v32 = vld [vmem:[#allocation5 + $0x150] sm:$0xff]  ;;  %632 = vmatprep.subr.mxu1 %v177_v30  ;;  %v222_v28 = vld [vmem:[#allocation5 + $0x2c0] sm:$0xff] }
  0x70   :  { %425 = vmatprep.subr.mxu0 %v135_v55  ;;  %v208_v33 = vld [vmem:[#allocation5 + $0x250] sm:$0xff]  ;;  %v165_v34 = vld [vmem:[#allocation5 + $0xf8] sm:$0xff]  ;;  %633 = vmatpush1.msra.mxu1 %v176_v32  ;;  %v211_v30 = vld [vmem:[#allocation5 + $0x268] sm:$0xff] }
  0x71   :  { %426 = vmatpush1.msra.mxu0 %v134_v57  ;;  %v197_v35 = vld [vmem:[#allocation5 + $0x1f8] sm:$0xff]  ;;  %v164_v36 = vld [vmem:[#allocation5 + $0xf0] sm:$0xff]  ;;  %634 = vmatprep.subr.mxu1 %v165_v34  ;;  %v210_v32 = vld [vmem:[#allocation5 + $0x260] sm:$0xff] }
  0x72   :  { %460 = vmatmul.mubr.f32.vlgmr.msra.gmra.mxu0 %v1465_v59  ;;  %466 = vmatprep.subr.mxu0 %v317_v60  ;;  %v196_v37 = vld [vmem:[#allocation5 + $0x1f0] sm:$0xff]  ;;  %v153_v38 = vld [vmem:[#allocation5 + $0x98] sm:$0xff]  ;;  %v318_v60 = vld [vmem:[#allocation5 + $0x5c0] sm:$0xff] }
  0x73   :  { %467 = vmatpush1.msra.mxu0 %v316_v61  ;;  %530 = vmatprep.mubr.f32.mxu0 %v1375_v1  ;;  %v185_v39 = vld [vmem:[#allocation5 + $0x198] sm:$0xff]  ;;  %v152_v40 = vld [vmem:[#allocation5 + $0x90] sm:$0xff]  ;;  %v307_v61 = vld [vmem:[#allocation5 + $0x568] sm:$0xff] }
  0x74   :  { %468 = vmatprep.subr.mxu0 %v305_v62  ;;  %v184_v41 = vld [vmem:[#allocation5 + $0x190] sm:$0xff]  ;;  %635 = vmatpush1.msra.mxu1 %v164_v36  ;;  %v141_v42 = vld [vmem:[#allocation5 + $0x38] sm:$0xff]  ;;  %v199_v34 = vld [vmem:[#allocation5 + $0x208] sm:$0xff] }
  0x75   :  { %469 = vmatpush1.msra.mxu0 %v304_v0  ;;  %v173_v43 = vld [vmem:[#allocation5 + $0x138] sm:$0xff]  ;;  %636 = vmatprep.subr.mxu1 %v153_v38  ;;  %v140_v44 = vld [vmem:[#allocation5 + $0x30] sm:$0xff]  ;;  %v198_v36 = vld [vmem:[#allocation5 + $0x200] sm:$0xff] }
  0x76   :  { %470 = vmatprep.subr.mxu0 %v293_v3  ;;  %v172_v45 = vld [vmem:[#allocation5 + $0x130] sm:$0xff]  ;;  %637 = vmatpush1.msra.mxu1 %v152_v40  ;;  %v161_v46 = vld [vmem:[#allocation5 + $0xd8] sm:$0xff]  ;;  %v187_v38 = vld [vmem:[#allocation5 + $0x1a8] sm:$0xff] }
  0x77   :  { %471 = vmatpush1.msra.mxu0 %v292_v5  ;;  %638 = vmatprep.subr.mxu1 %v141_v42  ;;  %v325_v47 = vld [vmem:[#allocation5 + $0x5f8] sm:$0xff]  ;;  %v160_v48 = vld [vmem:[#allocation5 + $0xd0] sm:$0xff]  ;;  %v186_v40 = vld [vmem:[#allocation5 + $0x1a0] sm:$0xff] }
  0x78   :  { %472 = vmatprep.subr.mxu0 %v281_v7  ;;  %639 = vmatpush1.msra.mxu1 %v140_v44  ;;  %v324_v49 = vld [vmem:[#allocation5 + $0x5f0] sm:$0xff]  ;;  %v149_v50 = vld [vmem:[#allocation5 + $0x78] sm:$0xff]  ;;  %v175_v42 = vld [vmem:[#allocation5 + $0x148] sm:$0xff] }
  0x79   :  { %473 = vmatpush1.msra.mxu0 %v280_v9  ;;  %673 = vmatmul.mubr.f32.vlgmr.msra.gmra.mxu1 %v1465_v59  ;;  %v313_v51 = vld [vmem:[#allocation5 + $0x598] sm:$0xff]  ;;  %v148_v52 = vld [vmem:[#allocation5 + $0x70] sm:$0xff]  ;;  %v174_v44 = vld [vmem:[#allocation5 + $0x140] sm:$0xff] }
  0x7a   :  { %474 = vmatprep.subr.mxu0 %v269_v11  ;;  %750 = vmatprep.subr.mxu1 %v325_v47  ;;  %v312_v53 = vld [vmem:[#allocation5 + $0x590] sm:$0xff]  ;;  %v137_v54 = vld [vmem:[#allocation5 + $0x18] sm:$0xff] }
  0x7b   :  { %475 = vmatpush1.msra.mxu0 %v268_v13  ;;  %751 = vmatpush1.msra.mxu1 %v324_v49  ;;  %v301_v55 = vld [vmem:[#allocation5 + $0x538] sm:$0xff]  ;;  %v136_v56 = vld [vmem:[#allocation5 + $0x10] sm:$0xff] }
  0x7c   :  { %476 = vmatprep.subr.mxu0 %v257_v15  ;;  %752 = vmatprep.subr.mxu1 %v313_v51  ;;  %v300_v57 = vld [vmem:[#allocation5 + $0x530] sm:$0xff]  ;;  %v289_v62 = vld [vmem:[#allocation5 + $0x4d8] sm:$0xff]  ;;  %v150_v51 = vld [vmem:[#allocation5 + $0x80] sm:$0xff] }
  0x7d   :  { %477 = vmatpush1.msra.mxu0 %v256_v17  ;;  %753 = vmatpush1.msra.mxu1 %v312_v53  ;;  %v288_v0 = vld [vmem:[#allocation5 + $0x4d0] sm:$0xff]  ;;  %v277_v3 = vld [vmem:[#allocation5 + $0x478] sm:$0xff]  ;;  %v138_v53 = vld [vmem:[#allocation5 + $0x20] sm:$0xff] }
  0x7e   :  { %478 = vmatprep.subr.mxu0 %v245_v19  ;;  %754 = vmatprep.subr.mxu1 %v301_v55  ;;  %v276_v5 = vld [vmem:[#allocation5 + $0x470] sm:$0xff]  ;;  %v265_v7 = vld [vmem:[#allocation5 + $0x418] sm:$0xff]  ;;  %v322_v55 = vld [vmem:[#allocation5 + $0x5e0] sm:$0xff] }
  0x7f   :  { %479 = vmatpush1.msra.mxu0 %v244_v21  ;;  %755 = vmatpush1.msra.mxu1 %v300_v57  ;;  %v264_v9 = vld [vmem:[#allocation5 + $0x410] sm:$0xff]  ;;  %v253_v11 = vld [vmem:[#allocation5 + $0x3b8] sm:$0xff]  ;;  %v310_v57 = vld [vmem:[#allocation5 + $0x580] sm:$0xff] }
  0x80   :  { %480 = vmatprep.subr.mxu0 %v233_v23  ;;  %756 = vmatprep.subr.mxu1 %v289_v62  ;;  %v252_v13 = vld [vmem:[#allocation5 + $0x3b0] sm:$0xff]  ;;  %v241_v15 = vld [vmem:[#allocation5 + $0x358] sm:$0xff]  ;;  %v286_v62 = vld [vmem:[#allocation5 + $0x4c0] sm:$0xff] }
  0x81   :  { %481 = vmatpush1.msra.mxu0 %v232_v25  ;;  %757 = vmatpush1.msra.mxu1 %v288_v0  ;;  %v240_v17 = vld [vmem:[#allocation5 + $0x350] sm:$0xff]  ;;  %v229_v19 = vld [vmem:[#allocation5 + $0x2f8] sm:$0xff]  ;;  %v274_v0 = vld [vmem:[#allocation5 + $0x460] sm:$0xff] }
  0x82   :  { %482 = vmatprep.subr.mxu0 %v221_v27  ;;  %758 = vmatprep.subr.mxu1 %v277_v3  ;;  %v228_v21 = vld [vmem:[#allocation5 + $0x2f0] sm:$0xff]  ;;  %v217_v23 = vld [vmem:[#allocation5 + $0x298] sm:$0xff]  ;;  %v262_v3 = vld [vmem:[#allocation5 + $0x400] sm:$0xff] }
  0x83   :  { %483 = vmatpush1.msra.mxu0 %v220_v29  ;;  %759 = vmatpush1.msra.mxu1 %v276_v5  ;;  %v216_v25 = vld [vmem:[#allocation5 + $0x290] sm:$0xff]  ;;  %v205_v27 = vld [vmem:[#allocation5 + $0x238] sm:$0xff]  ;;  %v250_v5 = vld [vmem:[#allocation5 + $0x3a0] sm:$0xff] }
  0x84   :  { %484 = vmatprep.subr.mxu0 %v209_v31  ;;  %760 = vmatprep.subr.mxu1 %v265_v7  ;;  %v204_v29 = vld [vmem:[#allocation5 + $0x230] sm:$0xff]  ;;  %v193_v31 = vld [vmem:[#allocation5 + $0x1d8] sm:$0xff]  ;;  %v238_v7 = vld [vmem:[#allocation5 + $0x340] sm:$0xff] }
  0x85   :  { %485 = vmatpush1.msra.mxu0 %v208_v33  ;;  %761 = vmatpush1.msra.mxu1 %v264_v9  ;;  %v192_v33 = vld [vmem:[#allocation5 + $0x1d0] sm:$0xff]  ;;  %v145_v47 = vld [vmem:[#allocation5 + $0x58] sm:$0xff]  ;;  %v226_v9 = vld [vmem:[#allocation5 + $0x2e0] sm:$0xff] }
  0x86   :  { %486 = vmatprep.subr.mxu0 %v197_v35  ;;  %762 = vmatprep.subr.mxu1 %v253_v11  ;;  %v181_v35 = vld [vmem:[#allocation5 + $0x178] sm:$0xff]  ;;  %v144_v49 = vld [vmem:[#allocation5 + $0x50] sm:$0xff]  ;;  %v214_v11 = vld [vmem:[#allocation5 + $0x280] sm:$0xff] }
  0x87   :  { %487 = vmatpush1.msra.mxu0 %v196_v37  ;;  %763 = vmatpush1.msra.mxu1 %v252_v13  ;;  %v180_v37 = vld [vmem:[#allocation5 + $0x170] sm:$0xff]  ;;  %v202_v13 = vld [vmem:[#allocation5 + $0x220] sm:$0xff] }
  0x88   :  { %488 = vmatprep.subr.mxu0 %v185_v39  ;;  %764 = vmatprep.subr.mxu1 %v241_v15  ;;  %v169_v39 = vld [vmem:[#allocation5 + $0x118] sm:$0xff]  ;;  %v190_v15 = vld [vmem:[#allocation5 + $0x1c0] sm:$0xff] }
  0x89   :  { %489 = vmatpush1.msra.mxu0 %v184_v41  ;;  %765 = vmatpush1.msra.mxu1 %v240_v17  ;;  %v168_v41 = vld [vmem:[#allocation5 + $0x110] sm:$0xff]  ;;  %v178_v17 = vld [vmem:[#allocation5 + $0x160] sm:$0xff] }
  0x8a   :  { %490 = vmatprep.subr.mxu0 %v173_v43  ;;  %766 = vmatprep.subr.mxu1 %v229_v19  ;;  %v157_v43 = vld [vmem:[#allocation5 + $0xb8] sm:$0xff]  ;;  %v166_v19 = vld [vmem:[#allocation5 + $0x100] sm:$0xff] }
  0x8b   :  { %491 = vmatpush1.msra.mxu0 %v172_v45  ;;  %767 = vmatpush1.msra.mxu1 %v228_v21  ;;  %v156_v45 = vld [vmem:[#allocation5 + $0xb0] sm:$0xff]  ;;  %v154_v21 = vld [vmem:[#allocation5 + $0xa0] sm:$0xff] }
  0x8c   :  { %492 = vmatprep.subr.mxu0 %v161_v46  ;;  %768 = vmatprep.subr.mxu1 %v217_v23  ;;  %v163_v46 = vld [vmem:[#allocation5 + $0xe8] sm:$0xff]  ;;  %v142_v23 = vld [vmem:[#allocation5 + $0x40] sm:$0xff] }
  0x8d   :  { %493 = vmatpush1.msra.mxu0 %v160_v48  ;;  %769 = vmatpush1.msra.mxu1 %v216_v25  ;;  %v162_v48 = vld [vmem:[#allocation5 + $0xe0] sm:$0xff] }
  0x8e   :  { %494 = vmatprep.subr.mxu0 %v149_v50  ;;  %770 = vmatprep.subr.mxu1 %v205_v27  ;;  %v151_v50 = vld [vmem:[#allocation5 + $0x88] sm:$0xff]  ;;  %v840_v25 = vld [vmem:[#allocation8 + $0x90] sm:$0xff] }
  0x8f   :  { %495 = vmatpush1.msra.mxu0 %v148_v52  ;;  %771 = vmatpush1.msra.mxu1 %v204_v29  ;;  %v139_v52 = vld [vmem:[#allocation5 + $0x28] sm:$0xff]  ;;  %v836_v29 = vld [vmem:[#allocation8 + $0x70] sm:$0xff] }
  0x90   :  { %496 = vmatprep.subr.mxu0 %v137_v54  ;;  %772 = vmatprep.subr.mxu1 %v193_v31  ;;  %v323_v54 = vld [vmem:[#allocation5 + $0x5e8] sm:$0xff] }
  0x91   :  { %497 = vmatpush1.msra.mxu0 %v136_v56  ;;  %773 = vmatpush1.msra.mxu1 %v192_v33  ;;  %v311_v56 = vld [vmem:[#allocation5 + $0x588] sm:$0xff]  ;;  %v832_v33 = vld [vmem:[#allocation8 + $0x50] sm:$0xff] }
  0x92   :  { %531 = vmatmul.mubr.f32.vlgmr.msra.gmra.mxu0 %v1465_v59  ;;  %537 = vmatprep.subr.mxu0 %v319_v58  ;;  %v299_v58 = vld [vmem:[#allocation5 + $0x528] sm:$0xff] }
  0x93   :  { %538 = vmatpush1.msra.mxu0 %v318_v60  ;;  %601 = vmatprep.mubr.f32.mxu0 %v1375_v1  ;;  %v298_v60 = vld [vmem:[#allocation5 + $0x520] sm:$0xff]  ;;  %v838_v27 = vld [vmem:[#allocation8 + $0x80] sm:$0xff] }
  0x94   :  { %539 = vmatprep.subr.mxu0 %v307_v61  ;;  %774 = vmatprep.subr.mxu1 %v181_v35  ;;  %v287_v61 = vld [vmem:[#allocation5 + $0x4c8] sm:$0xff] }
  0x95   :  { %540 = vmatpush1.msra.mxu0 %v306_v63  ;;  %775 = vmatpush1.msra.mxu1 %v180_v37  ;;  %v275_v63 = vld [vmem:[#allocation5 + $0x468] sm:$0xff]  ;;  %v960_v37 = vld [vmem:[#allocation10 + $0xe8] sm:$0xff] }
  0x96   :  { %541 = vmatprep.subr.mxu0 %v295_v2  ;;  %776 = vmatprep.subr.mxu1 %v169_v39  ;;  %v263_v2 = vld [vmem:[#allocation5 + $0x408] sm:$0xff]  ;;  %v828_v39 = vld [vmem:[#allocation8 + $0x30] sm:$0xff] }
  0x97   :  { %542 = vmatpush1.msra.mxu0 %v294_v4  ;;  %777 = vmatpush1.msra.mxu1 %v168_v41  ;;  %v251_v4 = vld [vmem:[#allocation5 + $0x3a8] sm:$0xff] }
  0x98   :  { %543 = vmatprep.subr.mxu0 %v283_v6  ;;  %778 = vmatprep.subr.mxu1 %v157_v43  ;;  %v239_v6 = vld [vmem:[#allocation5 + $0x348] sm:$0xff]  ;;  %v824_v43 = vld [vmem:[#allocation8 + $0x10] sm:$0xff] }
  0x99   :  { %544 = vmatpush1.msra.mxu0 %v282_v8  ;;  %779 = vmatpush1.msra.mxu1 %v156_v45  ;;  %v227_v8 = vld [vmem:[#allocation5 + $0x2e8] sm:$0xff] }
  0x9a   :  { %545 = vmatprep.subr.mxu0 %v271_v10  ;;  %780 = vmatprep.subr.mxu1 %v145_v47  ;;  %v215_v10 = vld [vmem:[#allocation5 + $0x288] sm:$0xff] }
  0x9b   :  { %546 = vmatpush1.msra.mxu0 %v270_v12  ;;  %781 = vmatpush1.msra.mxu1 %v144_v49  ;;  %v203_v12 = vld [vmem:[#allocation5 + $0x228] sm:$0xff]  ;;  %v956_v49 = vld [vmem:[#allocation10 + $0xc8] sm:$0xff] }
  0x9c   :  { %547 = vmatprep.subr.mxu0 %v259_v14  ;;  %814 = vmatprep.mubr.f32.mxu1 %v1375_v1  ;;  %v191_v14 = vld [vmem:[#allocation5 + $0x1c8] sm:$0xff] }
  0x9d   :  { %548 = vmatpush1.msra.mxu0 %v258_v16  ;;  %815 = vmatmul.mubr.f32.vlgmr.msra.gmra.mxu1 %v1465_v59  ;;  %v179_v16 = vld [vmem:[#allocation5 + $0x168] sm:$0xff] }
  0x9e   :  { %549 = vmatprep.subr.mxu0 %v247_v18  ;;  %v167_v18 = vld [vmem:[#allocation5 + $0x108] sm:$0xff] }
  0x9f   :  { %550 = vmatpush1.msra.mxu0 %v246_v20  ;;  %v155_v20 = vld [vmem:[#allocation5 + $0xa8] sm:$0xff] }
  0xa0   :  { %551 = vmatprep.subr.mxu0 %v235_v22  ;;  %v143_v22 = vld [vmem:[#allocation5 + $0x48] sm:$0xff] }
  0xa1   :  { %552 = vmatpush1.msra.mxu0 %v234_v24  ;;  %v841_v24 = vld [vmem:[#allocation8 + $0x98] sm:$0xff]  ;;  %v834_v31 = vld [vmem:[#allocation8 + $0x60] sm:$0xff] }
  0xa2   :  { %553 = vmatprep.subr.mxu0 %v223_v26  ;;  %v839_v26 = vld [vmem:[#allocation8 + $0x88] sm:$0xff]  ;;  %v830_v35 = vld [vmem:[#allocation8 + $0x40] sm:$0xff]  ;;  %v958_v47 = vld [vmem:[#allocation10 + $0xd8] sm:$0xff] }
  0xa3   :  { %554 = vmatpush1.msra.mxu0 %v222_v28  ;;  %v837_v28 = vld [vmem:[#allocation8 + $0x78] sm:$0xff]  ;;  %v826_v41 = vld [vmem:[#allocation8 + $0x20] sm:$0xff] }
  0xa4   :  { %555 = vmatprep.subr.mxu0 %v211_v30  ;;  %v835_v30 = vld [vmem:[#allocation8 + $0x68] sm:$0xff]  ;;  %v822_v45 = vld [vmem:[#allocation8] sm:$0xff] }
  0xa5   :  { %556 = vmatpush1.msra.mxu0 %v210_v32  ;;  %v833_v32 = vld [vmem:[#allocation8 + $0x58] sm:$0xff] }
  0xa6   :  { %557 = vmatprep.subr.mxu0 %v199_v34  ;;  %v831_v34 = vld [vmem:[#allocation8 + $0x48] sm:$0xff] }
  0xa7   :  { %558 = vmatpush1.msra.mxu0 %v198_v36  ;;  %v961_v36 = vld [vmem:[#allocation10 + $0xf0] sm:$0xff] }
  0xa8   :  { %559 = vmatprep.subr.mxu0 %v187_v38  ;;  %v829_v38 = vld [vmem:[#allocation8 + $0x38] sm:$0xff] }
  0xa9   :  { %560 = vmatpush1.msra.mxu0 %v186_v40  ;;  %v827_v40 = vld [vmem:[#allocation8 + $0x28] sm:$0xff] }
  0xaa   :  { %561 = vmatprep.subr.mxu0 %v175_v42  ;;  %v825_v42 = vld [vmem:[#allocation8 + $0x18] sm:$0xff] }
  0xab   :  { %562 = vmatpush1.msra.mxu0 %v174_v44  ;;  %v823_v44 = vld [vmem:[#allocation8 + $0x8] sm:$0xff] }
  0xac   :  { %563 = vmatprep.subr.mxu0 %v163_v46  ;;  %v821_v46 = vld [vmem:[%s1541_s1] sm:$0x3] }
  0xad   :  { %564 = vmatpush1.msra.mxu0 %v162_v48  ;;  %v957_v48 = vld [vmem:[#allocation10 + $0xd0] sm:$0xff] }
  0xae   :  { %565 = vmatprep.subr.mxu0 %v151_v50  ;;  %v955_v50 = vld [vmem:[#allocation10 + $0xc0] sm:$0xff] }
  0xaf   :  { %566 = vmatpush1.msra.mxu0 %v150_v51  ;;  %v954_v51 = vld [vmem:[#allocation10 + $0xb8] sm:$0xff] }
  0xb0   :  { %567 = vmatprep.subr.mxu0 %v139_v52  ;;  %v953_v52 = vld [vmem:[#allocation10 + $0xb0] sm:$0xff] }
  0xb1   :  { %568 = vmatpush1.msra.mxu0 %v138_v53  ;;  %v952_v53 = vld [vmem:[#allocation10 + $0xa8] sm:$0xff] }
  0xb2   :  { %602 = vmatmul.mubr.f32.vlgmr.msra.gmra.mxu0 %v1465_v59  ;;  %679 = vmatprep.subr.mxu0 %v323_v54  ;;  %v951_v54 = vld [vmem:[#allocation10 + $0xa0] sm:$0xff] }
  0xb3   :  { %680 = vmatpush1.msra.mxu0 %v322_v55  ;;  %743 = vmatprep.mubr.f32.mxu0 %v1375_v1  ;;  %v950_v55 = vld [vmem:[#allocation10 + $0x98] sm:$0xff] }
  0xb4   :  { %681 = vmatprep.subr.mxu0 %v311_v56  ;;  %v949_v56 = vld [vmem:[#allocation10 + $0x90] sm:$0xff] }
  0xb5   :  { %682 = vmatpush1.msra.mxu0 %v310_v57  ;;  %v948_v57 = vld [vmem:[#allocation10 + $0x88] sm:$0xff] }
  0xb6   :  { %683 = vmatprep.subr.mxu0 %v299_v58  ;;  %v947_v58 = vld [vmem:[#allocation10 + $0x80] sm:$0xff] }
  0xb7   :  { %684 = vmatpush1.msra.mxu0 %v298_v60  ;;  %v946_v60 = vld [vmem:[#allocation10 + $0x78] sm:$0xff] }
  0xb8   :  { %685 = vmatprep.subr.mxu0 %v287_v61  ;;  %v945_v61 = vld [vmem:[#allocation10 + $0x70] sm:$0xff] }
  0xb9   :  { %686 = vmatpush1.msra.mxu0 %v286_v62  ;;  %v944_v62 = vld [vmem:[#allocation10 + $0x68] sm:$0xff] }
  0xba   :  { %687 = vmatprep.subr.mxu0 %v275_v63  ;;  %v943_v63 = vld [vmem:[#allocation10 + $0x60] sm:$0xff] }
  0xbb   :  { %688 = vmatpush1.msra.mxu0 %v274_v0  ;;  %v942_v0 = vld [vmem:[#allocation10 + $0x58] sm:$0xff] }
  0xbc   :  { %689 = vmatprep.subr.mxu0 %v263_v2  ;;  %v941_v2 = vld [vmem:[#allocation10 + $0x50] sm:$0xff] }
  0xbd   :  { %690 = vmatpush1.msra.mxu0 %v262_v3  ;;  %v940_v3 = vld [vmem:[#allocation10 + $0x48] sm:$0xff] }
  0xbe   :  { %691 = vmatprep.subr.mxu0 %v251_v4  ;;  %v939_v4 = vld [vmem:[#allocation10 + $0x40] sm:$0xff] }
  0xbf   :  { %692 = vmatpush1.msra.mxu0 %v250_v5  ;;  %v938_v5 = vld [vmem:[#allocation10 + $0x38] sm:$0xff] }
  0xc0   :  { %693 = vmatprep.subr.mxu0 %v239_v6  ;;  %v937_v6 = vld [vmem:[#allocation10 + $0x30] sm:$0xff] }
  0xc1   :  { %694 = vmatpush1.msra.mxu0 %v238_v7  ;;  %v936_v7 = vld [vmem:[#allocation10 + $0x28] sm:$0xff] }
  0xc2   :  { %695 = vmatprep.subr.mxu0 %v227_v8  ;;  %v935_v8 = vld [vmem:[#allocation10 + $0x20] sm:$0xff] }
  0xc3   :  { %696 = vmatpush1.msra.mxu0 %v226_v9  ;;  %v934_v9 = vld [vmem:[#allocation10 + $0x18] sm:$0xff] }
  0xc4   :  { %697 = vmatprep.subr.mxu0 %v215_v10  ;;  %v933_v10 = vld [vmem:[#allocation10 + $0x10] sm:$0xff] }
  0xc5   :  { %698 = vmatpush1.msra.mxu0 %v214_v11  ;;  %v932_v11 = vld [vmem:[#allocation10 + $0x8] sm:$0xff] }
  0xc6   :  { %699 = vmatprep.subr.mxu0 %v203_v12  ;;  %v931_v12 = vld [vmem:[#allocation10] sm:$0xff] }
  0xc7   :  { %700 = vmatpush1.msra.mxu0 %v202_v13  ;;  %v994_v13 = vld [vmem:[#allocation10 + $0x1f8] sm:$0xff] }
  0xc8   :  { %701 = vmatprep.subr.mxu0 %v191_v14  ;;  %v993_v14 = vld [vmem:[#allocation10 + $0x1f0] sm:$0xff] }
  0xc9   :  { %702 = vmatpush1.msra.mxu0 %v190_v15  ;;  %v992_v15 = vld [vmem:[#allocation10 + $0x1e8] sm:$0xff] }
  0xca   :  { %703 = vmatprep.subr.mxu0 %v179_v16  ;;  %v991_v16 = vld [vmem:[#allocation10 + $0x1e0] sm:$0xff] }
  0xcb   :  { %704 = vmatpush1.msra.mxu0 %v178_v17  ;;  %v990_v17 = vld [vmem:[#allocation10 + $0x1d8] sm:$0xff] }
  0xcc   :  { %705 = vmatprep.subr.mxu0 %v167_v18  ;;  %v989_v18 = vld [vmem:[#allocation10 + $0x1d0] sm:$0xff] }
  0xcd   :  { %706 = vmatpush1.msra.mxu0 %v166_v19  ;;  %v988_v19 = vld [vmem:[#allocation10 + $0x1c8] sm:$0xff] }
  0xce   :  { %707 = vmatprep.subr.mxu0 %v155_v20  ;;  %v987_v20 = vld [vmem:[#allocation10 + $0x1c0] sm:$0xff] }
  0xcf   :  { %708 = vmatpush1.msra.mxu0 %v154_v21  ;;  %v986_v21 = vld [vmem:[#allocation10 + $0x1b8] sm:$0xff] }
  0xd0   :  { %709 = vmatprep.subr.mxu0 %v143_v22  ;;  %v985_v22 = vld [vmem:[#allocation10 + $0x1b0] sm:$0xff] }
  0xd1   :  { %710 = vmatpush1.msra.mxu0 %v142_v23  ;;  %v984_v23 = vld [vmem:[#allocation10 + $0x1a8] sm:$0xff] }
  0xd2   :  { %744 = vmatmul.mubr.f32.vlgmr.msra.gmra.mxu0 %v1465_v59  ;;  %870 = vmatprep.subr.mxu0 %v841_v24  ;;  %v962_v59 = vld [vmem:[#allocation10 + $0xf8] sm:$0xff]  ;;  %v983_v24 = vld [vmem:[#allocation10 + $0x1a0] sm:$0xff] }
  0xd3   :  { %871 = vmatpush1.msra.mxu0 %v840_v25  ;;  %922 = vmatprep.mubr.f32.mxu0 %v1375_v1  ;;  %v959_v1 = vld [vmem:[#allocation10 + $0xe0] sm:$0xff]  ;;  %v982_v25 = vld [vmem:[#allocation10 + $0x198] sm:$0xff] }
  0xd4   :  { %872 = vmatprep.subr.mxu0 %v839_v26  ;;  %1007 = vmatprep.subr.mxu1 %v962_v59  ;;  %v981_v26 = vld [vmem:[#allocation10 + $0x190] sm:$0xff]  ;;  %v971_v59 = vld [vmem:[#allocation10 + $0x140] sm:$0xff] }
  0xd5   :  { %873 = vmatpush1.msra.mxu0 %v838_v27  ;;  %1008 = vmatpush1.msra.mxu1 %v961_v36  ;;  %v980_v27 = vld [vmem:[#allocation10 + $0x188] sm:$0xff]  ;;  %v970_v36 = vld [vmem:[#allocation10 + $0x138] sm:$0xff] }
  0xd6   :  { %874 = vmatprep.subr.mxu0 %v837_v28  ;;  %1009 = vmatprep.subr.mxu1 %v960_v37  ;;  %v979_v28 = vld [vmem:[#allocation10 + $0x180] sm:$0xff]  ;;  %v969_v37 = vld [vmem:[#allocation10 + $0x130] sm:$0xff] }
  0xd7   :  { %875 = vmatpush1.msra.mxu0 %v836_v29  ;;  %1010 = vmatpush1.msra.mxu1 %v959_v1  ;;  %v978_v29 = vld [vmem:[#allocation10 + $0x178] sm:$0xff]  ;;  %v967_v1 = vld [vmem:[#allocation10 + $0x120] sm:$0xff] }
  0xd8   :  { %876 = vmatprep.subr.mxu0 %v835_v30  ;;  %1011 = vmatprep.subr.mxu1 %v958_v47  ;;  %v977_v30 = vld [vmem:[#allocation10 + $0x170] sm:$0xff] }
  0xd9   :  { %877 = vmatpush1.msra.mxu0 %v834_v31  ;;  %1012 = vmatpush1.msra.mxu1 %v957_v48  ;;  %v976_v31 = vld [vmem:[#allocation10 + $0x168] sm:$0xff]  ;;  %v326_v47 = vld [vmem:[#allocation7] sm:$0xff] }
  0xda   :  { %878 = vmatprep.subr.mxu0 %v833_v32  ;;  %1013 = vmatprep.subr.mxu1 %v956_v49  ;;  %v975_v32 = vld [vmem:[#allocation10 + $0x160] sm:$0xff] }
  0xdb   :  { %879 = vmatpush1.msra.mxu0 %v832_v33  ;;  %1014 = vmatpush1.msra.mxu1 %v955_v50  ;;  %v974_v33 = vld [vmem:[#allocation10 + $0x158] sm:$0xff] }
  0xdc   :  { %880 = vmatprep.subr.mxu0 %v831_v34  ;;  %1015 = vmatprep.subr.mxu1 %v954_v51  ;;  %v973_v34 = vld [vmem:[#allocation10 + $0x150] sm:$0xff]  ;;  %v1080_v51 = vld [vmem:[%s1548_s8] sm:$0xff] }
  0xdd   :  { %881 = vmatpush1.msra.mxu0 %v830_v35  ;;  %1016 = vmatpush1.msra.mxu1 %v953_v52  ;;  %v972_v35 = vld [vmem:[#allocation10 + $0x148] sm:$0xff] }
  0xde   :  { %882 = vmatprep.subr.mxu0 %v829_v38  ;;  %1017 = vmatprep.subr.mxu1 %v952_v53  ;;  %v968_v38 = vld [vmem:[#allocation10 + $0x128] sm:$0xff] }
  0xdf   :  { %883 = vmatpush1.msra.mxu0 %v828_v39  ;;  %1018 = vmatpush1.msra.mxu1 %v951_v54  ;;  %v966_v39 = vld [vmem:[#allocation10 + $0x118] sm:$0xff] }
  0xe0   :  { %884 = vmatprep.subr.mxu0 %v827_v40  ;;  %1019 = vmatprep.subr.mxu1 %v950_v55  ;;  %v965_v40 = vld [vmem:[#allocation10 + $0x110] sm:$0xff] }
  0xe1   :  { %885 = vmatpush1.msra.mxu0 %v826_v41  ;;  %1020 = vmatpush1.msra.mxu1 %v949_v56  ;;  %v964_v41 = vld [vmem:[#allocation10 + $0x108] sm:$0xff] }
  0xe2   :  { %886 = vmatprep.subr.mxu0 %v825_v42  ;;  %1021 = vmatprep.subr.mxu1 %v948_v57  ;;  %v963_v42 = vld [vmem:[#allocation10 + $0x100] sm:$0xff] }
  0xe3   :  { %887 = vmatpush1.msra.mxu0 %v824_v43  ;;  %1022 = vmatpush1.msra.mxu1 %v947_v58  ;;  %v330_v43 = vlaneseq }
  0xe4   :  { %888 = vmatprep.subr.mxu0 %v823_v44  ;;  %1023 = vmatprep.subr.mxu1 %v946_v60 }
  0xe5   :  { %889 = vmatpush1.msra.mxu0 %v822_v45  ;;  %1024 = vmatpush1.msra.mxu1 %v945_v61  ;;  %v331_v44 = vshrl.u32 %v330_v43, 7 }
  0xe6   :  { %1220 = vmatmul.mubr.msk.f32.vlgmr.msra.gmra.mxu0 %vm854_vm1, %v821_v46  ;;  %1025 = vmatprep.subr.mxu1 %v944_v62 }
  0xe7   :  { %1026 = vmatpush1.msra.mxu1 %v943_v63  ;;  %v1481_v45 = vsub.s32 0, %v331_v44  ;;  %v1483_v46 = vsub.s32 1, %v331_v44  ;;  %v1485_v49 = vsub.s32 2, %v331_v44  ;;  %v1493_v55 = vsub.s32 3, %v331_v44 }
  0xe8   :  { %1027 = vmatprep.subr.mxu1 %v942_v0  ;;  %v348_v62 = vsub.s32 4, %v331_v44 }
  0xe9   :  { %1028 = vmatpush1.msra.mxu1 %v941_v2  ;;  %v333_v50 = vrot.slane %v326_v47, %v1481_v45  ;;  %v337_v52 = vrot.slane %v326_v47, %v1483_v46  ;;  %v341_v54 = vrot.slane %v326_v47, %v1485_v49  ;;  %v1087_v56 = vrot.slane %v1080_v51, %v1481_v45 }
  0xea   :  { %1029 = vmatprep.subr.mxu1 %v940_v3  ;;  %v1091_v61 = vrot.slane %v1080_v51, %v1483_v46  ;;  %v1095_v0 = vrot.slane %v1080_v51, %v1485_v49  ;;  %v345_v2 = vrot.slane %v326_v47, %v1493_v55 }
  0xeb   :  { %1030 = vmatpush1.msra.mxu1 %v939_v4  ;;  %v352_v4 = vsub.s32 5, %v331_v44 }
  0xec   :  { %1031 = vmatprep.subr.mxu1 %v938_v5 }
  0xed   :  { %1032 = vmatpush1.msra.mxu1 %v937_v6 }
  0xee   :  { %1033 = vmatprep.subr.mxu1 %v936_v7  ;;  %v349_v7 = vrot.slane %v326_v47, %v348_v62 }
  0xef   :  { %1034 = vmatpush1.msra.mxu1 %v935_v8 }
  0xf0   :  { %1035 = vmatprep.subr.mxu1 %v934_v9 }
  0xf1   :  { %1036 = vmatpush1.msra.mxu1 %v933_v10 }
  0xf2   :  { %1037 = vmatprep.subr.mxu1 %v932_v11  ;;  %v1099_v11 = vrot.slane %v1080_v51, %v1493_v55 }
  0xf3   :  { %1038 = vmatpush1.msra.mxu1 %v931_v12  ;;  %v1103_v12 = vrot.slane %v1080_v51, %v348_v62 }
  0xf4   :  { %1039 = vmatprep.subr.mxu1 %v994_v13  ;;  %v353_v13 = vrot.slane %v326_v47, %v352_v4 }
  0xf5   :  { %1040 = vmatpush2.msra.mxu1 %v993_v14 }
  0xf6   :  { %1041 = vmatprep.subr.mxu1 %v992_v15 }
  0xf7   :  { %1042 = vmatpush2.msra.mxu1 %v991_v16 }
  0xf8   :  { %1043 = vmatprep.subr.mxu1 %v990_v17  ;;  %v356_v17 = vsub.s32 6, %v331_v44 }
  0xf9   :  { %1044 = vmatpush2.msra.mxu1 %v989_v18 }
  0xfa   :  { %1045 = vmatprep.subr.mxu1 %v988_v19 }
  0xfb   :  { %1046 = vmatpush2.msra.mxu1 %v987_v20 }
  0xfc   :  { %1047 = vmatprep.subr.mxu1 %v986_v21 }
  0xfd   :  { %1048 = vmatpush2.msra.mxu1 %v985_v22  ;;  %v1107_v22 = vrot.slane %v1080_v51, %v352_v4 }
  0xfe   :  { %1049 = vmatprep.subr.mxu1 %v984_v23 }
  0xff   :  { %1050 = vmatpush2.msra.mxu1 %v983_v24 }
 0x100   :  { %1051 = vmatprep.subr.mxu1 %v982_v25  ;;  %v357_v25 = vrot.slane %v326_v47, %v356_v17 }
 0x101   :  { %1052 = vmatpush2.msra.mxu1 %v981_v26  ;;  %v360_v26 = vsub.s32 7, %v331_v44  ;;  %v1081_v44 = vld [vmem:[%s1548_s8 + $0x8] sm:$0xf] }
 0x102   :  { %1053 = vmatprep.subr.mxu1 %v980_v27 }
 0x103   :  { %1054 = vmatpush2.msra.mxu1 %v979_v28 }
 0x104   :  { %1055 = vmatprep.subr.mxu1 %v978_v29 }
 0x105   :  { %1056 = vmatpush2.msra.mxu1 %v977_v30  ;;  %v1111_v30 = vrot.slane %v1080_v51, %v356_v17 }
 0x106   :  { %1057 = vmatprep.subr.mxu1 %v976_v31 }
 0x107   :  { %1058 = vmatpush2.msra.mxu1 %v975_v32 }
 0x108   :  { %1059 = vmatprep.subr.mxu1 %v974_v33 }
 0x109   :  { %1060 = vmatpush2.msra.mxu1 %v973_v34  ;;  %v361_v34 = vrot.slane %v326_v47, %v360_v26 }
 0x10a   :  { %1061 = vmatprep.subr.mxu1 %v972_v35 }
 0x10b   :  { %1062 = vmatpush2.msra.mxu1 %v971_v59 }
 0x10c   :  { %1063 = vmatprep.subr.mxu1 %v970_v36 }
 0x10d   :  { %1064 = vmatpush2.msra.mxu1 %v969_v37 }
 0x10e   :  { %1065 = vmatprep.subr.mxu1 %v968_v38 }
 0x10f   :  { %1066 = vmatpush2.msra.mxu1 %v967_v1 }
 0x110   :  { %1067 = vmatprep.subr.mxu1 %v966_v39  ;;  %v1115_v39 = vrot.slane %v1080_v51, %v360_v26 }
 0x111   :  { %1068 = vmatpush2.msra.mxu1 %v965_v40  ;;  %v327_v40 = vld [vmem:[#allocation7 + $0x8] sm:$0xf] }
 0x112   :  { %1069 = vmatprep.subr.mxu1 %v964_v41  ;;  %v369_v51 = vrot.slane %v327_v40, %v1483_v46 }
 0x113   :  { %1070 = vmatpush2.msra.mxu1 %v963_v42  ;;  %v373_v42 = vrot.slane %v327_v40, %v1485_v49 }
 0x132   :  { %v461_v48 = vpop.f32.mrf.mxu0 }
 0x133   :  { %v462_v58 = vadd.f32 %v461_v48, %v333_v50  ;;  %v365_v50 = vrot.slane %v327_v40, %v1481_v45 }
 0x134   :  { %v463_v53 = vpop.f32.mrf.mxu0 }
 0x135   :  { %v464_v60 = vadd.f32 %v463_v53, %v337_v52  ;;  %v1144_v5 = vmul.f32 %v1087_v56, %v462_v58  ;;  %v377_v52 = vrot.slane %v327_v40, %v1493_v55 }
 0x137   :  { %v1145_v6 = vmul.f32 %v1091_v61, %v464_v60  ;;  %v1157_v14 = vsel %vm1156_vm2, %v1144_v5, 0.0  ;;  %v1123_v61 = vrot.slane %v1081_v44, %v1483_v46 }
 0x139   :  { %v1158_v15 = vsel %vm1156_vm2, %v1145_v6, 0.0  ;;  %v674_v28 = vpop.f32.mrf.mxu1 }
 0x13a   :  { %v1159_v21 = vadd.f32 %v1158_v15, %v1157_v14  ;;  %v675_v33 = vadd.f32 %v674_v28, %v357_v25  ;;  %v995_v25 = vld [vmem:[#allocation11] sm:$0x3] }
 0x13b   :  { %v676_v59 = vpop.f32.mrf.mxu1  ;;  %v1000_v26 = vrot.slane %v995_v25, %v1481_v45  ;;  %v1004_v28 = vrot.slane %v995_v25, %v1483_v46 }
 0x13c   :  { %v1150_v38 = vmul.f32 %v1111_v30, %v675_v33  ;;  %v677_v1 = vadd.f32 %v676_v59, %v361_v34 }
 0x13e   :  { %v1168_v48 = vsel %vm1156_vm2, %v1150_v38, 0.0  ;;  %v1151_v47 = vmul.f32 %v1115_v39, %v677_v1 }
 0x140   :  { %v1170_v62 = vsel %vm1156_vm2, %v1151_v47, 0.0 }
 0x152   :  { %v532_v57 = vpop.f32.mrf.mxu0 }
 0x153   :  { %v533_v63 = vadd.f32 %v532_v57, %v341_v54  ;;  %v1119_v54 = vrot.slane %v1081_v44, %v1481_v45  ;;  %v1127_v57 = vrot.slane %v1081_v44, %v1485_v49 }
 0x154   :  { %v534_v3 = vpop.f32.mrf.mxu0 }
 0x155   :  { %v1146_v9 = vmul.f32 %v1095_v0, %v533_v63  ;;  %v535_v10 = vadd.f32 %v534_v3, %v345_v2  ;;  %v1131_v2 = vrot.slane %v1081_v44, %v1493_v55  ;;  %v842_v55 = vld [vmem:[%s1545_s5] sm:$0x3] }
 0x156   :  { %v847_v17 = vrot.slane %v842_v55, %v1481_v45 }
 0x157   :  { %v1160_v19 = vsel %vm1156_vm2, %v1146_v9, 0.0  ;;  %v1147_v20 = vmul.f32 %v1099_v11, %v535_v10 }
 0x158   :  { %v1161_v27 = vadd.f32 %v1160_v19, %v1159_v21 }
 0x159   :  { %v1162_v29 = vsel %vm1156_vm2, %v1147_v20, 0.0 }
 0x15a   :  { %v1163_v35 = vadd.f32 %v1162_v29, %v1161_v27  ;;  %v1182_v27 = vld [vmem:[%s1549_s9] sm:$0x3] }
 0x15d   :  { %v816_v41 = vpop.f32.mrf.mxu1 }
 0x15e   :  { %v817_v56 = vadd.f32 %v816_v41, %v373_v42  ;;  %v1221_v41 = vld [vmem:[#allocation2] ss:$0 sm:$0xff] }
 0x15f   :  { %v818_v53 = vpop.f32.mrf.mxu1 }
 0x160   :  { %v819_v0 = vadd.f32 %v818_v53, %v377_v52  ;;  %v1154_v6 = vmul.f32 %v1127_v57, %v817_v56 }
 0x162   :  { %v1155_v10 = vmul.f32 %v1131_v2, %v819_v0 }
 0x164   :  { %v1178_v14 = vsel %vm1156_vm2, %v1155_v10, 0.0 }
 0x172   :  { %v603_v8 = vpop.f32.mrf.mxu0 }
 0x173   :  { %v604_v16 = vadd.f32 %v603_v8, %v349_v7 }
 0x174   :  { %v605_v18 = vpop.f32.mrf.mxu0 }
 0x175   :  { %v1148_v23 = vmul.f32 %v1103_v12, %v604_v16  ;;  %v606_v24 = vadd.f32 %v605_v18, %v353_v13  ;;  %v1176_v12 = vsel %vm1156_vm2, %v1154_v6, 0.0  ;;  %v851_v18 = vrot.slane %v842_v55, %v1483_v46 }
 0x177   :  { %v1164_v31 = vsel %vm1156_vm2, %v1148_v23, 0.0  ;;  %v1149_v32 = vmul.f32 %v1107_v22, %v606_v24 }
 0x178   :  { %v1165_v36 = vadd.f32 %v1164_v31, %v1163_v35  ;;  %v1187_v31 = vrot.slane %v1182_v27, %v1481_v45  ;;  %v1191_v35 = vrot.slane %v1182_v27, %v1483_v46 }
 0x179   :  { %v1166_v37 = vsel %vm1156_vm2, %v1149_v32, 0.0 }
 0x17a   :  { %v1167_v43 = vadd.f32 %v1166_v37, %v1165_v36 }
 0x17c   :  { %v1169_v58 = vadd.f32 %v1168_v48, %v1167_v43 }
 0x17e   :  { %v1171_v7 = vadd.f32 %v1170_v62, %v1169_v58 }
 0x192   :  { %v745_v60 = vpop.f32.mrf.mxu0 }
 0x193   :  { %v746_v63 = vadd.f32 %v745_v60, %v365_v50 }
 0x194   :  { %v747_v3 = vpop.f32.mrf.mxu0 }
 0x195   :  { %v1152_v4 = vmul.f32 %v1119_v54, %v746_v63  ;;  %v748_v5 = vadd.f32 %v747_v3, %v369_v51 }
 0x197   :  { %v1172_v8 = vsel %vm1156_vm2, %v1152_v4, 0.0  ;;  %v1153_v9 = vmul.f32 %v1123_v61, %v748_v5 }
 0x198   :  { %v1173_v49 = vadd.f32 %v1172_v8, %v1171_v7 }
 0x199   :  { %v1174_v11 = vsel %vm1156_vm2, %v1153_v9, 0.0 }
 0x19a   :  { %v1175_v13 = vadd.f32 %v1174_v11, %v1173_v49 }
 0x19c   :  { %v1177_v15 = vadd.f32 %v1176_v12, %v1175_v13 }
 0x19e   :  { %v1179_v16 = vadd.f32 %v1178_v14, %v1177_v15 }
 0x1a0   :  { %1180 = vadd.xlane.f32.xlu0 %v1179_v16 }
 0x1a6   :  { %v924_v19 = vpop.f32.mrf.mxu0 }
 0x1a7   :  { %v925_v20 = vadd.f32 %v924_v19, %v847_v17 }
 0x1a8   :  { %v926_v21 = vpop.f32.mrf.mxu0 }
 0x1a9   :  { %v927_v22 = vadd.f32 %v926_v21, %v851_v18  ;;  %v929_v24 = vmax.f32 %v925_v20, 0.0 }
 0x1ab   :  { %v930_v23 = vmax.f32 %v927_v22, 0.0 }
 0x1ad   :  { %1071 = vmatprep.mubr.f32.mxu1 %v930_v23 }
 0x1ae   :  { %1072 = vmatmul.mubr.f32.vlgmr.msra.gmra.mxu1 %v929_v24 }
 0x229   :  { %v1181_v40 = vpop.xlane.xlu0 %1180 }
 0x26e   :  { %v1073_v29 = vpop.f32.mrf.mxu1 }
 0x26f   :  { %v1074_v30 = vadd.f32 %v1073_v29, %v1000_v26 }
 0x270   :  { %v1075_v32 = vpop.f32.mrf.mxu1 }
 0x271   :  { %v1078_v33 = vmax.f32 %v1074_v30, 0.0  ;;  %v1076_v34 = vadd.f32 %v1075_v32, %v1004_v28 }
 0x273   :  { %v1194_v59 = vmul.f32 %v1187_v31, %v1078_v33  ;;  %v1079_v36 = vmax.f32 %v1076_v34, 0.0 }
 0x275   :  { %v1195_v37 = vmul.f32 %v1191_v35, %v1079_v36  ;;  %v1196_v38 = vsel %vm1156_vm2, %v1194_v59, 0.0 }
 0x277   :  { %v1197_v1 = vsel %vm1156_vm2, %v1195_v37, 0.0 }
 0x278   :  { %v1198_v39 = vadd.f32 %v1197_v1, %v1196_v38 }
 0x27a   :  { %1199 = vadd.xlane.f32.xlu0 %v1198_v39 }
 0x303   :  { %v1200_v42 = vpop.xlane.xlu0 %1199 }
 0x304   :  { %v1201_v43 = vadd.f32 %v1200_v42, %v1181_v40 }
 0x306   :  { %v1209_v45 = vadd.f32 %v1221_v41, %v1201_v43 }
 0x308   :  { %1211 = vst.msk [vmem:[%s1551_s11] sm:$0x3] %vm1210_vm3, %v1209_v45 }
 0x309   :  { %1216 = vsyncpa [#allocation4], 1 }
 0x30a   :  { %1217 = vsyncpa [#allocation6], 1 }
 0x30b   :  { %1218 = vsyncpa [#allocation9], 1 }
 0x30c   :  { %1219 = vsyncpa [#allocation12], 1 }

</bundles_post_ra>
